<compile_context>
chip_gen: v6e
topology: v6e:2x2x1
jax: 0.10.0
libtpu: 0.0.40
codegen_flags: <defaults>
</compile_context>

<pallas_src>
import numpy as np
import jax
import jax.numpy as jnp
from jax import lax
from jax.experimental import pallas as pl
from jax.experimental.pallas import tpu as pltpu

HW = 16          # 4x4 spatial positions per sample
DIM = 64         # conv channels


# ---------------------------------------------------------------------------
# pltpu.roll direction probe (tiny one-time kernel, run eagerly in prep_params
# -- never inside a traced forward pass).
# ---------------------------------------------------------------------------
_ROLL_NP = None   # True iff pltpu.roll follows np.roll (out[i] = x[i - shift])


def _probe_roll_convention():
    global _ROLL_NP
    if _ROLL_NP is not None:
        return _ROLL_NP

    def _probe_kernel(x_ref, o_ref):
        o_ref[...] = pltpu.roll(x_ref[...], 1, 0)

    x = jnp.broadcast_to(jnp.arange(16, dtype=jnp.float32)[:, None], (16, 128))
    y = pl.pallas_call(
        _probe_kernel,
        out_shape=jax.ShapeDtypeStruct((16, 128), jnp.float32),
    )(x)
    v = float(jax.device_get(y)[0, 0])
    # np.roll(x, 1, 0)[0] == x[-1] == 15 ; the opposite convention gives 1.
    _ROLL_NP = not (abs(v - 1.0) < 0.5)
    return _ROLL_NP


def _row_shift(x, d):
    """out[r] = x[(r + d) % nrows]; rows whose in-sample coordinate leaves
    [0,4) are zeroed by the caller's precomputed boundary mask."""
    if d == 0:
        return x
    n = x.shape[0]
    shift = (-d) % n if _ROLL_NP else (d % n)
    return pltpu.roll(x, shift, 0)


# ---------------------------------------------------------------------------
# Fused kernel (one batch tile of TB samples = 16*TB hw-major rows per step):
#   feat_spe+conv0 -> conv1(+res,ReLU) -> pool -> conv2(+res,ReLU) -> pool
#   -> ReLU -> classifier
# ---------------------------------------------------------------------------
def _mlpcnn_kernel(x_ref, wy0_ref, w1_ref, b1_ref, w2_ref, b2_ref,
                   wc_ref, bc_ref, m1_ref, m2_ref, out_ref):
    tb = x_ref.shape[0]
    xf = x_ref[...].astype(jnp.bfloat16)                 # (TB, in_lanes)

    # ---- feat_spe + reshape + 1x1 conv0 (folded weight; bias in ones-lane).
    # Row layout is hw-major: row = hw*TB + b.
    y0 = jnp.concatenate(
        [jnp.dot(xf, wy0_ref[hw], preferred_element_type=jnp.float32)
         for hw in range(HW)], axis=0)                    # (16*TB, 64) f32

    def im2col(x, step, m_ref):
        """3x3 taps (stride `step` on the 4x4 hw grid) concatenated on lanes;
        out-of-bounds taps zeroed by the precomputed (rows, 576) mask."""
        x16 = x.astype(jnp.bfloat16)
        blocks = []
        for dh in (-1, 0, 1):
            for dw in (-1, 0, 1):
                d = (4 * dh + dw) * step * tb
                blocks.append(_row_shift(x16, d))
        return jnp.concatenate(blocks, axis=1) * m_ref[...]

    # ---- conv1 (3x3, pad=1) + residual (identity folded into centre tap) ---
    y1 = jnp.dot(im2col(y0, 1, m1_ref), w1_ref[...],
                 preferred_element_type=jnp.float32) + b1_ref[...]
    a1 = jnp.maximum(y1, 0.0)

    # ---- avgpool 2x2/2 (4x4 -> 2x2); valid on rows with even h and even w --
    s = a1 + _row_shift(a1, tb)               # + right neighbour (hw+1)
    q = 0.25 * (s + _row_shift(s, 4 * tb))    # + lower neighbour (hw+4)

    # ---- conv2 (3x3, pad=1 on the 2x2 map) + residual (centre-tap identity)-
    y2 = jnp.dot(im2col(q, 2, m2_ref), w2_ref[...],
                 preferred_element_type=jnp.float32) + b2_ref[...]
    a2 = jnp.maximum(y2, 0.0)

    # ---- avgpool 2x2/2 (2x2 -> 1x1) + flatten: hw in {0,2,8,10} ------------
    feats = 0.25 * (a2[0 * tb:1 * tb] + a2[2 * tb:3 * tb]
                    + a2[8 * tb:9 * tb] + a2[10 * tb:11 * tb])
    feats = jnp.maximum(feats, 0.0)                       # (TB, 64)

    # ---- classifier; output padded to 128 lanes (lane-dense stores) --------
    out_ref[...] = (jnp.dot(feats.astype(jnp.bfloat16), wc_ref[...],
                            preferred_element_type=jnp.float32) + bc_ref[...])


# ---------------------------------------------------------------------------
# Parameters (deterministic synthetic init, PyTorch tensor layouts).
# ---------------------------------------------------------------------------
def init_params(key, num_features=8, dim=64, num_classes=9):
    ks = jax.random.split(key, 10)

    def nrm(k, shape, fan_in):
        return jax.random.normal(k, shape, jnp.float32) / np.sqrt(fan_in)

    return dict(
        fc_w=nrm(ks[0], (256, num_features), num_features),     # Linear(8, 256)
        fc_b=0.05 * jax.random.normal(ks[1], (256,), jnp.float32),
        conv0_w=nrm(ks[2], (64, 16, 1, 1), 16),                  # Conv2d(16,64,1)
        conv0_b=0.05 * jax.random.normal(ks[3], (64,), jnp.float32),
        conv1_w=nrm(ks[4], (64, 64, 3, 3), 64 * 9),              # Conv2d(64,64,3,p=1)
        conv1_b=0.05 * jax.random.normal(ks[5], (64,), jnp.float32),
        conv2_w=nrm(ks[6], (64, 64, 3, 3), 64 * 9),              # Conv2d(64,64,3,p=1)
        conv2_b=0.05 * jax.random.normal(ks[7], (64,), jnp.float32),
        cls_w=nrm(ks[8], (num_classes, dim), dim),               # Linear(64, 9)
        cls_b=0.05 * jax.random.normal(ks[9], (num_classes,), jnp.float32),
    )


# ---------------------------------------------------------------------------
# One-time weight / constant preparation (hoisted out of the forward pass).
# ---------------------------------------------------------------------------
def prep_params(params, tb=8):
    assert tb >= 8 and tb % 8 == 0
    _probe_roll_convention()                 # eager, outside any traced code

    nf = params['fc_w'].shape[1]                          # num_features
    in_lanes = 8 * ((nf + 1 + 7) // 8)                    # features + 1 lane

    W0 = params['conv0_w'][:, :, 0, 0]                    # (64, 16) [co, ci]
    b0 = params['conv0_b']
    Wfc = params['fc_w'].reshape(16, HW, nf)              # [ci, hw, k]
    bfc = params['fc_b'].reshape(16, HW)                  # [ci, hw]

    # feat_spe + NCHW->(hw-major rows, lanes=co) + 1x1 conv0 folded into one
    # (HW, in_lanes, 64) tensor; the bias goes to the constant-1 lane `nf`.
    Wcomb = jnp.einsum('oc,chk->hko', W0, Wfc)            # (HW, nf, 64)
    bcomb = jnp.einsum('oc,ch->ho', W0, bfc) + b0[None, :]
    Wy0 = (jnp.zeros((HW, in_lanes, DIM), jnp.float32)
           .at[:, :nf, :].set(Wcomb).at[:, nf, :].set(bcomb))

    def conv_cat(w):   # (co, ci, 3, 3) -> (576, 64); +I on the centre tap
        wt = jnp.transpose(w, (2, 3, 1, 0)).reshape(9 * DIM, DIM)
        return wt.at[4 * DIM:5 * DIM, :].add(jnp.eye(DIM, dtype=wt.dtype))

    num_classes = params['cls_w'].shape[0]
    out_lanes = 128 * ((num_classes + 127) // 128)
    WcT = jnp.zeros((DIM, out_lanes), jnp.float32).at[:, :num_classes].set(
        params['cls_w'].T)
    bc = jnp.zeros((1, out_lanes), jnp.float32).at[0, :num_classes].set(
        params['cls_b'])

    # Precomputed boundary masks (hw-major rows, one 64-lane block per tap).
    # A tap is zeroed exactly when its in-sample coordinate leaves [0,4),
    # which also covers every wrapped pltpu.roll row.
    def build_mask(step):
        m = np.zeros((HW, 9 * DIM), np.float32)
        for hw in range(HW):
            hh, ww = hw // 4, hw % 4
            t = 0
            for dh in (-1, 0, 1):
                for dw in (-1, 0, 1):
                    hs, ws = hh + dh * step, ww + dw * step
                    if 0 <= hs < 4 and 0 <= ws < 4:
                        m[hw, t * DIM:(t + 1) * DIM] = 1.0
                    t += 1
        return jnp.asarray(np.repeat(m, tb, axis=0), jnp.bfloat16)

    return dict(
        tb=tb, nf=nf, in_lanes=in_lanes,
        Wy0=Wy0.astype(jnp.bfloat16),
        W1=conv_cat(params['conv1_w']).astype(jnp.bfloat16),
        b1=params['conv1_b'].reshape(1, DIM),
        W2=conv_cat(params['conv2_w']).astype(jnp.bfloat16),
        b2=params['conv2_b'].reshape(1, DIM),
        Wc=WcT.astype(jnp.bfloat16), bc=bc,
        mask1=build_mask(1), mask2=build_mask(2),
        num_classes=num_classes, out_lanes=out_lanes,
    )


def _choose_tb(B):
    """Batch tile (samples per grid step).  Bigger tiles amortize the ~0.35us
    fixed per-step overhead; capped at 64 (1024 rows, a few MiB of VMEM) and
    kept <= B/2 when possible so the grid has >=2 steps (v7x megacore)."""
    if B <= 16:
        return 8
    return max(8, min(64, (B // 2) // 8 * 8))


# ---------------------------------------------------------------------------
# Forward pass.
# ---------------------------------------------------------------------------
def mlpcnn_forward(x, params, prep=None, tb=None):
    B = x.shape[0]
    if prep is None:
        prep = prep_params(params, tb if tb is not None else _choose_tb(B))
    tb = prep['tb']
    nf, in_lanes = prep['nf'], prep['in_lanes']
    rows = HW * tb
    out_lanes = prep['out_lanes']

    grid_n = -(-B // tb)
    B_pad = grid_n * tb

    # (B_pad, in_lanes): spectral features, a constant-1 lane (carries the
    # folded feat_spe/conv0 bias) and zero padding.  ~64 B/sample of HBM in.
    xf = x.reshape(B, -1).astype(jnp.float32)             # torch.flatten(x,1,2)
    xin = (jnp.zeros((B_pad, in_lanes), jnp.float32)
           .at[:B, :nf].set(xf).at[:B, nf].set(1.0))

    out = pl.pallas_call(
        _mlpcnn_kernel,
        out_shape=jax.ShapeDtypeStruct((B_pad, out_lanes), jnp.float32),
        grid_spec=pltpu.PrefetchScalarGridSpec(
            num_scalar_prefetch=0,
            grid=(grid_n,),
            in_specs=[
                pl.BlockSpec((tb, in_lanes), lambda i: (i, 0)),          # xin
                pl.BlockSpec((HW, in_lanes, DIM), lambda i: (0, 0, 0)),  # Wy0
                pl.BlockSpec((9 * DIM, DIM), lambda i: (0, 0)),          # W1
                pl.BlockSpec((1, DIM), lambda i: (0, 0)),                # b1
                pl.BlockSpec((9 * DIM, DIM), lambda i: (0, 0)),          # W2
                pl.BlockSpec((1, DIM), lambda i: (0, 0)),                # b2
                pl.BlockSpec((DIM, out_lanes), lambda i: (0, 0)),        # Wc
                pl.BlockSpec((1, out_lanes), lambda i: (0, 0)),          # bc
                pl.BlockSpec((rows, 9 * DIM), lambda i: (0, 0)),         # mask1
                pl.BlockSpec((rows, 9 * DIM), lambda i: (0, 0)),         # mask2
            ],
            out_specs=pl.BlockSpec((tb, out_lanes), lambda i: (i, 0)),
        ),
        compiler_params=pltpu.CompilerParams(
            dimension_semantics=("parallel",),
            vmem_limit_bytes=32 * 1024 * 1024,
        ),
    )(xin, prep['Wy0'], prep['W1'], prep['b1'], prep['W2'], prep['b2'],
      prep['Wc'], prep['bc'], prep['mask1'], prep['mask2'])

    return out[:B, :prep['num_classes']]


# ---------------------------------------------------------------------------
# Pure-JAX reference (mirrors the PyTorch NCHW forward) for validation.
# ---------------------------------------------------------------------------
def _avgpool_nchw(x):
    B, C, H, W = x.shape
    return x.reshape(B, C, H // 2, 2, W // 2, 2).mean(axis=(3, 5))


def reference_forward(x, p):
    B = x.shape[0]
    dn = ('NCHW', 'OIHW', 'NCHW')
    h = x.reshape(B, -1) @ p['fc_w'].T + p['fc_b']
    h = h.reshape(B, 16, 4, 4)
    h = lax.conv_general_dilated(h, p['conv0_w'], (1, 1), 'VALID',
                                 dimension_numbers=dn) + p['conv0_b'][None, :, None, None]
    res = h
    h = lax.conv_general_dilated(h, p['conv1_w'], (1, 1), [(1, 1), (1, 1)],
                                 dimension_numbers=dn) + p['conv1_b'][None, :, None, None]
    h = jnp.maximum(h + res, 0.0)
    h = _avgpool_nchw(h)
    res = h
    h = lax.conv_general_dilated(h, p['conv2_w'], (1, 1), [(1, 1), (1, 1)],
                                 dimension_numbers=dn) + p['conv2_b'][None, :, None, None]
    h = jnp.maximum(h + res, 0.0)
    h = _avgpool_nchw(h)
    h = jnp.maximum(h.reshape(B, -1), 0.0)
    return h @ p['cls_w'].T + p['cls_b']


# ---------------------------------------------------------------------------
if __name__ == "__main__":
    B = 2
    # Input (B, 2, 4): torch.flatten(x, 1, 2) gives the 8 spectral features
    # expected by feat_spe (num_features=8).
    x = jax.random.normal(jax.random.PRNGKey(0), (B, 2, 4), jnp.float32)
    params = init_params(jax.random.PRNGKey(1))
    prep = prep_params(params, tb=_choose_tb(B))

    out = mlpcnn_forward(x, params, prep)
    out = jax.block_until_ready(out)
    assert out.shape == (B, 9) and out.dtype == jnp.float32

    ref = jax.block_until_ready(reference_forward(x, params))
    np.testing.assert_allclose(np.asarray(out), np.asarray(ref),
                               rtol=5e-2, atol=5e-2)
    print("KERNEL_OK")
</pallas_src>

<mosaic_0001>
module attributes {stable_mosaic.version = 11 : i64} {
  func.func @_probe_kernel(%arg0: memref<16x128xf32, #tpu.memory_space<vmem>>, %arg1: memref<16x128xf32, #tpu.memory_space<vmem>>) attributes {dimension_semantics = [], scalar_prefetch = 0 : i64, scratch_operands = 0 : i64, tpu.core_type = #tpu.core_type<tc>} {
    %c0 = arith.constant 0 : index
    %c0_0 = arith.constant 0 : index
    %0 = vector.load %arg0[%c0, %c0_0] : memref<16x128xf32, #tpu.memory_space<vmem>>, vector<16x128xf32>
    %c1_i32 = arith.constant 1 : i32
    %1 = tpu.dynamic_rotate %0 by %c1_i32 dim 0 : vector<16x128xf32>, i32 -> vector<16x128xf32>
    %c0_1 = arith.constant 0 : index
    %c0_2 = arith.constant 0 : index
    %2 = vector.load %arg1[%c0_1, %c0_2] : memref<16x128xf32, #tpu.memory_space<vmem>>, vector<16x128xf32>
    tpu.vector_store %arg1[%c0_1, %c0_2], %1 {strides = array<i32>} : memref<16x128xf32, #tpu.memory_space<vmem>>, vector<16x128xf32>,
    return
  }
}

</mosaic_0001>

<bundles_post_ra>
// kernel: tpu_custom_call.1
= control target key start
LH: loop header
LB: loop body
LE: loop exit
PB: predicated region body
PF: predicated region fallthrough
CT: control target
= control target key end

     0   :  { %6 = vsyncpa [#allocation3], 0  ;;  %s119_s0 = inlined_call_operand.hbm [shape: f32[16,128], index: 0, kind: input, shape index: {}]   ;;  %s120_s1 = inlined_call_operand.hbm [shape: f32[16,128], index: 1, kind: output, shape index: {}]  }
   0x1   :  { %7 = vsyncpa [#allocation4], 0  ;;  %s99_s6 = smov [#allocation2]  }
   0x2   :  { %s13_s7 = sshll.u32 %s99_s6, 4  ;;  %s14_s7 = int_to_ptr.vmem [resolvable:$true] %s13_s7 }
   0x3   :  { %s63_s8 = scalar_lea.vmem %s14_s7, 256  ;;  %p68_p1 = scmp.lt.s32.totalorder %s14_s7, %s14_s7 }
   0x4   :  { %p64_p0 = scmp.ne.s32.totalorder %s14_s7, %s63_s8  ;;  %p69_p2 = scmp.lt.s32.totalorder %s63_s8, %s63_s8 }
   0x6   :  { %p70_p3 = por %p69_p2, %p68_p1 }
   0x8   :  { %p71_p4 = pnand %p70_p3, %p64_p0 }
   0xa   :  { %74 = shalt.err (!%p71_p4)
}
   0xb   :  { %s100_s9 = smov 128   ;;  %s101_s10 = smov 8  }
   0xc   :  { %19 = dma.hbm_to_vmem [thread:$0]  %s119_s0, 256, %s14_s7, [#allocation3], %s100_s9, %s100_s9, %s101_s10  }
   0xd   :  { %95 = dma.done.wait [#allocation3], 256  }
   0xe   :  { %96 = vsyncadd [#allocation3], 4294967040  ;;  %v27_v0 = vlaneseq  ;;  %s102_s13 = smov [#allocation5]   ;;  %v23_v2 = vld [vmem:[#allocation2] sm:$0xff]  ;;  %v24_v3 = vld [vmem:[#allocation2 + $0x8] sm:$0xff] }
   0xf   :  { %s39_s14 = sshll.u32 %s102_s13, 4  ;;  %v25_v4 = vrot.slane %v23_v2, 7  ;;  %v26_v5 = vrot.slane %v24_v3, 7  ;;  %s40_s14 = int_to_ptr.vmem [resolvable:$true] %s39_s14 }
  0x10   :  { %v28_v1 = vshrl.u32 %v27_v0, 7  ;;  %s75_s15 = scalar_lea.vmem %s40_s14, 256  ;;  %p80_p6 = scmp.lt.s32.totalorder %s40_s14, %s40_s14 }
  0x11   :  { %p76_p5 = scmp.ne.s32.totalorder %s40_s14, %s75_s15  ;;  %p81_p7 = scmp.lt.s32.totalorder %s75_s15, %s75_s15 }
  0x12   :  { %vm29_vm0 = vcmp.lt.s32.totalorder %v28_v1, 1 }
  0x13   :  { %v31_v6 = vsel %vm29_vm0, %v26_v5, %v25_v4  ;;  %v30_v7 = vsel %vm29_vm0, %v25_v4, %v26_v5  ;;  %p82_p8 = por %p81_p7, %p80_p6 }
  0x14   :  { %32 = vst [vmem:[#allocation5] sm:$0xff] %v31_v6  ;;  %33 = vst [vmem:[#allocation5 + $0x8] sm:$0xff] %v30_v7 }
  0x15   :  { %p83_p9 = pnand %p82_p8, %p76_p5 }
  0x17   :  { %86 = shalt.err (!%p83_p9)
}
  0x18   :  { %45 = dma.vmem_to_hbm [thread:$0]  %s40_s14, 256, %s120_s1, [#allocation4], %s100_s9, %s100_s9, %s101_s10  }
  0x19   :  { %97 = dma.done.wait [#allocation4], 256  }
  0x1a   :  { %98 = vsyncadd [#allocation4], 4294967040 }
  0x1b   :  { %49 = vsyncpa [#allocation3], 1 }
  0x1c   :  { %50 = vsyncpa [#allocation4], 1 }

</bundles_post_ra>
